<compile_context>
chip_gen: v5e
topology: v5e:2x2
jax: 0.10.0
libtpu: 0.0.40
codegen_flags: <defaults>
</compile_context>

<pallas_src>
import functools
import math

import jax
import jax.numpy as jnp
from jax import lax
from jax.experimental import pallas as pl
from jax.experimental.pallas import tpu as pltpu

_LANE = 128


def _accuracy_kernel(labels_ref, preds_ref, match_ref, weight_ref, *,
                     num_classes, logit_thr, ignore_idx, p_lanes, tp,
                     needs_mask):
    labels = labels_ref[0]                    # (tp, 128) int32
    best = preds_ref[0, 0]                    # (tp, 128) native preds dtype
    arg = jnp.zeros(labels.shape, jnp.int32)  # running argmax (first-max ties)
    for c in range(1, num_classes):           # unrolled: pure VPU max/select
        p = preds_ref[0, c]
        take = p > best
        best = jnp.where(take, p, best)
        arg = jnp.where(take, c, arg)

    # any(sigmoid > t) over classes  ==  max_logit > logit(t)
    pred_labels = jnp.where(best > logit_thr, arg + 1, 0)   # (tp, 128) int32

    match = pred_labels == labels
    weight = labels != ignore_idx

    if needs_mask:
        # Ragged tail tile: sublane rows >= rows_left hold stale VMEM garbage.
        j = pl.program_id(1)
        rows_left = p_lanes - j * tp
        row_ids = lax.broadcasted_iota(jnp.int32, labels.shape, 0)
        valid = row_ids < rows_left
        match = jnp.logical_and(match, valid)
        weight = jnp.logical_and(weight, valid)

    # Sublane-reduce to lane-dense (1, 128) partials (XLU/VPU slack is free
    # under the HBM roofline) -> tiny per-step writeback.
    match_ref[0, 0] = jnp.sum(match.astype(jnp.float32), axis=0, keepdims=True)
    weight_ref[0, 0] = jnp.sum(weight.astype(jnp.float32), axis=0, keepdims=True)


def _vmem_capacity_bytes():
    try:
        cap = getattr(pltpu.get_tpu_info(), "vmem_capacity_bytes", None)
        if cap:
            return int(cap)
    except Exception:
        pass
    return 128 * 1024 * 1024   # v5e / v6e physical VMEM


@functools.partial(jax.jit, static_argnames=("dim", "ignore_idx", "threshold",
                                             "encode_background_as_zeros"))
def accuracy_forward(labels, preds, *, dim=1, ignore_idx=-1, threshold=0.5,
                     encode_background_as_zeros=True):
    """Accuracy value (shape (1,)), matching Accuracy.forward on freshly
    zeroed total/count buffers."""
    assert dim == 1 and encode_background_as_zeros, \
        "kernel implements the default dim=1 / encode_background_as_zeros=True path"
    assert 0.0 < float(threshold) < 1.0, "logit-threshold trick needs 0 < t < 1"
    # TODO(synk): explicit `weights` argument path not implemented (weights=None only).
    # TODO(synk): running-buffer accumulation across calls (self.total/self.count)
    #             stays on the JAX side; this returns the first-call value.

    N = labels.shape[0]
    P = int(math.prod(labels.shape[1:]))
    C = preds.shape[1]
    assert preds.shape[0] == N and int(math.prod(preds.shape[2:])) == P

    logit_thr = float(math.log(threshold / (1.0 - threshold)))

    # astype is a no-op when labels are already int32 (convert_element_type
    # short-circuits under jit); narrower dtypes are widened once here.
    # TODO(synk): pass int8/int16 labels through natively and widen in-kernel.
    labels_flat = labels.reshape(N, P).astype(jnp.int32)
    preds_flat = preds.reshape(N, C, P)            # keep native dtype (bf16 ok)

    # Lane padding only when P is not a multiple of 128 (needed for the free
    # (..., p_lanes, 128) reshape).  Padded pixels: labels = ignore_idx ->
    # weight 0, and a negative label can never match pred_labels >= 0.
    p_lanes = -(-P // _LANE)
    p_pad = p_lanes * _LANE
    if p_pad != P:
        assert ignore_idx < 0, "lane padding requires a negative ignore_idx"
        # TODO(synk): this is one extra HBM copy of preds; only taken when
        #             H*W % 128 != 0.
        labels_flat = jnp.pad(labels_flat, ((0, 0), (0, p_pad - P)),
                              constant_values=ignore_idx)
        preds_flat = jnp.pad(preds_flat, ((0, 0), (0, 0), (0, p_pad - P)))

    labels3 = labels_flat.reshape(N, p_lanes, _LANE)
    preds4 = preds_flat.reshape(N, C, p_lanes, _LANE)

    # ---- per-chip pixel tiling: ~8 MiB of inputs per step, 2x buffered ----
    pred_itemsize = jnp.dtype(preds.dtype).itemsize
    bytes_per_row = _LANE * (C * pred_itemsize + 4)      # preds + int32 labels
    vmem_cap = _vmem_capacity_bytes()
    db_budget = min(vmem_cap // 4, 16 * 1024 * 1024)     # double-buffered inputs
    per_step_budget = db_budget // 2
    tp_budget = max(8, (per_step_budget // bytes_per_row) // 8 * 8)
    if p_lanes <= tp_budget:
        tp, npt = p_lanes, 1       # full-extent block (legal even if % 8 != 0)
    else:
        tp = tp_budget
        npt = -(-p_lanes // tp)
    needs_mask = (npt * tp) != p_lanes      # ragged tail tile -> mask in kernel
    vmem_limit = int(min(vmem_cap // 2, 32 * 1024 * 1024))

    kernel = functools.partial(
        _accuracy_kernel, num_classes=C, logit_thr=logit_thr,
        ignore_idx=int(ignore_idx), p_lanes=p_lanes, tp=tp,
        needs_mask=needs_mask)

    # TODO(synk): for very large C (tiny per-class DMA chunks) consider
    #             pipeline_mode=pl.Buffered(3) on the preds BlockSpec.
    match_p, weight_p = pl.pallas_call(
        kernel,
        out_shape=(jax.ShapeDtypeStruct((N, npt, 1, _LANE), jnp.float32),
                   jax.ShapeDtypeStruct((N, npt, 1, _LANE), jnp.float32)),
        grid_spec=pltpu.PrefetchScalarGridSpec(
            num_scalar_prefetch=0,
            grid=(N, npt),
            in_specs=[
                pl.BlockSpec((1, tp, _LANE), lambda n, j: (n, j, 0)),       # labels
                pl.BlockSpec((1, C, tp, _LANE), lambda n, j: (n, 0, j, 0)), # preds
            ],
            out_specs=(
                pl.BlockSpec((1, 1, 1, _LANE), lambda n, j: (n, j, 0, 0)),  # match
                pl.BlockSpec((1, 1, 1, _LANE), lambda n, j: (n, j, 0, 0)),  # weight
            ),
        ),
        compiler_params=pltpu.CompilerParams(
            dimension_semantics=("parallel", "parallel"),
            vmem_limit_bytes=vmem_limit),
    )(labels3, preds4)

    total = jnp.sum(match_p)
    count = jnp.maximum(jnp.sum(weight_p), 1.0)   # clamp(sum(weights), min=1.0)
    return (total / count).reshape(1)


def _accuracy_ref(labels, preds, *, threshold=0.5, ignore_idx=-1):
    """Pure-JAX reference mirroring the PyTorch forward."""
    scores = jax.nn.sigmoid(preds.astype(jnp.float32))
    labels_pred = jnp.argmax(preds, axis=1).astype(jnp.int32) + 1
    pred_labels = jnp.where(jnp.any(scores > threshold, axis=1), labels_pred, 0)
    N = labels.shape[0]
    labels2 = labels.reshape(N, -1)
    pred2 = pred_labels.reshape(N, -1)
    weights = (labels2 != ignore_idx).astype(jnp.float32)
    num_examples = jnp.maximum(jnp.sum(weights), 1.0)
    total = jnp.sum((pred2 == labels2).astype(jnp.float32))
    return (total / num_examples).reshape(1)


if __name__ == "__main__":
    key = jax.random.PRNGKey(0)
    k_preds, k_labels = jax.random.split(key)

    N, C, H, W = 2, 4, 16, 16
    preds = jax.random.normal(k_preds, (N, C, H, W), dtype=jnp.float32)
    # labels in {-1 (ignore), 0 (background), 1..C}
    labels = jax.random.randint(k_labels, (N, H, W), -1, C + 1).astype(jnp.int32)

    out = accuracy_forward(labels, preds)
    jax.block_until_ready(out)

    ref = _accuracy_ref(labels, preds)
    assert out.shape == (1,) and jnp.allclose(out, ref, atol=1e-6), (out, ref)

    print("KERNEL_OK")
</pallas_src>

<mosaic_0001>
module attributes {stable_mosaic.version = 11 : i64} {
  func.func @_accuracy_kernel(%arg0: i32, %arg1: i32, %arg2: memref<1x2x128xi32, #tpu.memory_space<vmem>>, %arg3: memref<1x4x2x128xf32, #tpu.memory_space<vmem>>, %arg4: memref<1x1x1x128xf32, #tpu.memory_space<vmem>>, %arg5: memref<1x1x1x128xf32, #tpu.memory_space<vmem>>) attributes {dimension_semantics = [#tpu.dimension_semantics<parallel>, #tpu.dimension_semantics<parallel>], iteration_bounds = array<i64: 2, 1>, scalar_prefetch = 0 : i64, scratch_operands = 0 : i64, tpu.core_type = #tpu.core_type<tc>, window_params = [{transform_indices = @transform_0, window_bounds = array<i64: 1, 2, 128>}, {transform_indices = @transform_1, window_bounds = array<i64: 1, 4, 2, 128>}, {transform_indices = @transform_2, window_bounds = array<i64: 1, 1, 1, 128>}, {transform_indices = @transform_3, window_bounds = array<i64: 1, 1, 1, 128>}]} {
    %c0 = arith.constant 0 : index
    %c0_0 = arith.constant 0 : index
    %c0_1 = arith.constant 0 : index
    %0 = vector.load %arg2[%c0, %c0_0, %c0_1] : memref<1x2x128xi32, #tpu.memory_space<vmem>>, vector<1x2x128xi32>
    %1 = vector.shape_cast %0 : vector<1x2x128xi32> to vector<2x128xi32>
    %c0_2 = arith.constant 0 : index
    %c0_3 = arith.constant 0 : index
    %c0_4 = arith.constant 0 : index
    %c0_5 = arith.constant 0 : index
    %2 = vector.load %arg3[%c0_2, %c0_3, %c0_4, %c0_5] : memref<1x4x2x128xf32, #tpu.memory_space<vmem>>, vector<1x1x2x128xf32>
    %3 = vector.shape_cast %2 : vector<1x1x2x128xf32> to vector<2x128xf32>
    %c0_i32 = arith.constant 0 : i32
    %4 = vector.broadcast %c0_i32 : i32 to vector<2x128xi32>
    %c0_6 = arith.constant 0 : index
    %c1 = arith.constant 1 : index
    %c0_7 = arith.constant 0 : index
    %c0_8 = arith.constant 0 : index
    %5 = vector.load %arg3[%c0_6, %c1, %c0_7, %c0_8] : memref<1x4x2x128xf32, #tpu.memory_space<vmem>>, vector<1x1x2x128xf32>
    %6 = vector.shape_cast %5 : vector<1x1x2x128xf32> to vector<2x128xf32>
    %7 = arith.cmpf ogt, %6, %3 : vector<2x128xf32>
    %8 = arith.select %7, %6, %3 : vector<2x128xi1>, vector<2x128xf32>
    %c1_i32 = arith.constant 1 : i32
    %9 = vector.broadcast %c1_i32 : i32 to vector<2x128xi32>
    %10 = arith.select %7, %9, %4 : vector<2x128xi1>, vector<2x128xi32>
    %c0_9 = arith.constant 0 : index
    %c2 = arith.constant 2 : index
    %c0_10 = arith.constant 0 : index
    %c0_11 = arith.constant 0 : index
    %11 = vector.load %arg3[%c0_9, %c2, %c0_10, %c0_11] : memref<1x4x2x128xf32, #tpu.memory_space<vmem>>, vector<1x1x2x128xf32>
    %12 = vector.shape_cast %11 : vector<1x1x2x128xf32> to vector<2x128xf32>
    %13 = arith.cmpf ogt, %12, %8 : vector<2x128xf32>
    %14 = arith.select %13, %12, %8 : vector<2x128xi1>, vector<2x128xf32>
    %c2_i32 = arith.constant 2 : i32
    %15 = vector.broadcast %c2_i32 : i32 to vector<2x128xi32>
    %16 = arith.select %13, %15, %10 : vector<2x128xi1>, vector<2x128xi32>
    %c0_12 = arith.constant 0 : index
    %c3 = arith.constant 3 : index
    %c0_13 = arith.constant 0 : index
    %c0_14 = arith.constant 0 : index
    %17 = vector.load %arg3[%c0_12, %c3, %c0_13, %c0_14] : memref<1x4x2x128xf32, #tpu.memory_space<vmem>>, vector<1x1x2x128xf32>
    %18 = vector.shape_cast %17 : vector<1x1x2x128xf32> to vector<2x128xf32>
    %19 = arith.cmpf ogt, %18, %14 : vector<2x128xf32>
    %20 = arith.select %19, %18, %14 : vector<2x128xi1>, vector<2x128xf32>
    %c3_i32 = arith.constant 3 : i32
    %21 = vector.broadcast %c3_i32 : i32 to vector<2x128xi32>
    %22 = arith.select %19, %21, %16 : vector<2x128xi1>, vector<2x128xi32>
    %cst = arith.constant 0.000000e+00 : f32
    %23 = vector.broadcast %cst : f32 to vector<2x128xf32>
    %24 = arith.cmpf ogt, %20, %23 : vector<2x128xf32>
    %c1_i32_15 = arith.constant 1 : i32
    %25 = vector.broadcast %c1_i32_15 : i32 to vector<2x128xi32>
    %26 = arith.addi %22, %25 : vector<2x128xi32>
    %c0_i32_16 = arith.constant 0 : i32
    %27 = vector.broadcast %c0_i32_16 : i32 to vector<2x128xi32>
    %28 = arith.select %24, %26, %27 : vector<2x128xi1>, vector<2x128xi32>
    %29 = arith.cmpi eq, %28, %1 : vector<2x128xi32>
    %c-1_i32 = arith.constant -1 : i32
    %30 = vector.broadcast %c-1_i32 : i32 to vector<2x128xi32>
    %31 = arith.cmpi ne, %1, %30 : vector<2x128xi32>
    %32 = arith.extui %29 : vector<2x128xi1> to vector<2x128xi32>
    %33 = arith.sitofp %32 : vector<2x128xi32> to vector<2x128xf32>
    %cst_17 = arith.constant dense<0.000000e+00> : vector<128xf32>
    %34 = vector.multi_reduction <add>, %33, %cst_17 [0] : vector<2x128xf32> to vector<128xf32>
    %35 = vector.shape_cast %34 : vector<128xf32> to vector<1x128xf32>
    %c0_18 = arith.constant 0 : index
    %c0_19 = arith.constant 0 : index
    %c0_20 = arith.constant 0 : index
    %c0_21 = arith.constant 0 : index
    %36 = vector.load %arg4[%c0_18, %c0_19, %c0_20, %c0_21] : memref<1x1x1x128xf32, #tpu.memory_space<vmem>>, vector<1x1x1x128xf32>
    %37 = vector.shape_cast %36 : vector<1x1x1x128xf32> to vector<1x128xf32>
    %38 = vector.shape_cast %35 : vector<1x128xf32> to vector<1x1x1x128xf32>
    tpu.vector_store %arg4[%c0_18, %c0_19, %c0_20, %c0_21], %38 {strides = array<i32>} : memref<1x1x1x128xf32, #tpu.memory_space<vmem>>, vector<1x1x1x128xf32>,
    %39 = arith.extui %31 : vector<2x128xi1> to vector<2x128xi32>
    %40 = arith.sitofp %39 : vector<2x128xi32> to vector<2x128xf32>
    %cst_22 = arith.constant dense<0.000000e+00> : vector<128xf32>
    %41 = vector.multi_reduction <add>, %40, %cst_22 [0] : vector<2x128xf32> to vector<128xf32>
    %42 = vector.shape_cast %41 : vector<128xf32> to vector<1x128xf32>
    %c0_23 = arith.constant 0 : index
    %c0_24 = arith.constant 0 : index
    %c0_25 = arith.constant 0 : index
    %c0_26 = arith.constant 0 : index
    %43 = vector.load %arg5[%c0_23, %c0_24, %c0_25, %c0_26] : memref<1x1x1x128xf32, #tpu.memory_space<vmem>>, vector<1x1x1x128xf32>
    %44 = vector.shape_cast %43 : vector<1x1x1x128xf32> to vector<1x128xf32>
    %45 = vector.shape_cast %42 : vector<1x128xf32> to vector<1x1x1x128xf32>
    tpu.vector_store %arg5[%c0_23, %c0_24, %c0_25, %c0_26], %45 {strides = array<i32>} : memref<1x1x1x128xf32, #tpu.memory_space<vmem>>, vector<1x1x1x128xf32>,
    return
  }
  func.func @transform_0(%arg0: i32, %arg1: i32) -> (i32, i32, i32) {
    %c0_i32 = arith.constant 0 : i32
    %c0_i32_0 = arith.constant 0 : i32
    return %arg0, %arg1, %c0_i32 : i32, i32, i32
  }
  func.func @transform_1(%arg0: i32, %arg1: i32) -> (i32, i32, i32, i32) {
    %c0_i32 = arith.constant 0 : i32
    %c0_i32_0 = arith.constant 0 : i32
    %c0_i32_1 = arith.constant 0 : i32
    return %arg0, %c0_i32, %arg1, %c0_i32_0 : i32, i32, i32, i32
  }
  func.func @transform_2(%arg0: i32, %arg1: i32) -> (i32, i32, i32, i32) {
    %c0_i32 = arith.constant 0 : i32
    %c0_i32_0 = arith.constant 0 : i32
    %c0_i32_1 = arith.constant 0 : i32
    return %arg0, %arg1, %c0_i32, %c0_i32_0 : i32, i32, i32, i32
  }
  func.func @transform_3(%arg0: i32, %arg1: i32) -> (i32, i32, i32, i32) {
    %c0_i32 = arith.constant 0 : i32
    %c0_i32_0 = arith.constant 0 : i32
    %c0_i32_1 = arith.constant 0 : i32
    return %arg0, %arg1, %c0_i32, %c0_i32_0 : i32, i32, i32, i32
  }
}

</mosaic_0001>

<bundles_post_ra>
// kernel: accuracy_forward.1
= control target key start
LH: loop header
LB: loop body
LE: loop exit
PB: predicated region body
PF: predicated region fallthrough
CT: control target
= control target key end

     0   :  { %s495_s12 = smov 0   ;;  %s497_s13 = smov 0   ;;  %s542_s0 = inlined_call_operand.vmem [shape: s32[2,2,128], index: 0, kind: input, shape index: {}]   ;;  %s543_s1 = inlined_call_operand.vmem [shape: f32[2,4,2,128], index: 1, kind: input, shape index: {}]   ;;  %s544_s2 = inlined_call_operand.vmem [shape: f32[2,1,1,128], index: 2, kind: output, shape index: {0}]   ;;  %s545_s3 = inlined_call_operand.vmem [shape: f32[2,1,1,128], index: 3, kind: output, shape index: {1}]  }
   0x1   :  { %s499_s14 = smov 0  }
   0x2 LB: > { %s26_s15 = sadd.s32 1, %s467_s13  ;;  %p411_p0 = scmp.ge.s32.totalorder %s471_s14, 1  ;;  %s471_s14 = sphi %s499_s14, %s14_s14   ;;  %s467_s13 = sphi %s497_s13, %s547_s13   ;;  %s463_s12 = sphi %s495_s12, %s546_s12  }
   0x3   : > { %p28_p1 = scmp.ge.s32.totalorder %s26_s15, 2  ;;  %p175_p2 = scmp.lt.s32.totalorder %s471_s14, 3 }
   0x5   : > { %s549_s15 = smov (%p28_p1, %s26_s15), 0  ;;  %p176_p3 = pnand %p411_p0, %p175_p2 }
   0x6   : > { %p216_p4 = scmp.lt.s32.totalorder (!%p176_p3), %s463_s12, 1 }
   0x7   : > { %179 = sbr.rel (%p176_p3) target bundleno = 42 (0x2a), region = 28 }
   0xc   : > { %s551_s12 = smov (!%p216_p4, %s463_s12), 1  ;;  %vm267_vm0 = vcmask 1041408   ;;  %v473_v5 = vmov 0   ;;  %v474_v8 = vmov 0.0  }
   0xd   : > { %s412_s16 = sshll.u32 %s551_s12, 1  ;;  %s422_s17 = sshll.u32 %s551_s12, 3 }
   0xe   : > { %s222_s20 = scalar_lea.vmem %s542_s0, %s412_s16  ;;  %s230_s23 = scalar_lea.vmem %s543_s1, %s422_s17 }
   0xf   : > { %v243_v0 = vld [vmem:[%s222_s20] sm:$0x3]  ;;  %v415_v2 = vld [vmem:[%s230_s23 + $0x2] sm:$0x3]  ;;  %v416_v3 = vld [vmem:[%s230_s23 + $0x4] sm:$0x3]  ;;  %s242_s26 = scalar_lea.vmem %s545_s3, %s551_s12  ;;  %s236_s29 = scalar_lea.vmem %s544_s2, %s551_s12 }
  0x10   : > { %v244_v1 = vld [vmem:[%s230_s23] sm:$0x3]  ;;  %vm264_vm2 = vcmp.ne.s32.totalorder %v243_v0, 4294967295  ;;  %v417_v7 = vld [vmem:[%s230_s23 + $0x6] sm:$0x3] }
  0x11   : > { %vm247_vm1 = vcmp.gt.f32.partialorder %v415_v2, %v244_v1  ;;  %v419_v9 = vsel %vm264_vm2, 1.0, %v474_v8 }
  0x12   : > { %v248_v4 = vsel %vm247_vm1, %v415_v2, %v244_v1  ;;  %v249_v6 = vsel %vm247_vm1, 1, %v473_v5  ;;  %v278_v10 = vsel %vm267_vm0, %v419_v9, 0.0 }
  0x13   : > { %vm252_vm3 = vcmp.gt.f32.partialorder %v416_v3, %v248_v4  ;;  %v279_v13 = vrot.slane %v278_v10, 4 }
  0x14   : > { %v253_v11 = vsel %vm252_vm3, %v416_v3, %v248_v4  ;;  %v254_v12 = vsel %vm252_vm3, 2, %v249_v6 }
  0x15   : > { %vm257_vm4 = vcmp.gt.f32.partialorder %v417_v7, %v253_v11  ;;  %v280_v16 = vadd.f32 %v279_v13, %v278_v10 }
  0x16   : > { %v258_v14 = vsel %vm257_vm4, %v417_v7, %v253_v11  ;;  %v259_v15 = vsel %vm257_vm4, 3, %v254_v12 }
  0x17   : > { %vm260_vm5 = vcmp.gt.f32.partialorder %v258_v14, 0.0  ;;  %v261_v17 = vadd.s32 1, %v259_v15  ;;  %v281_v18 = vrot.slane %v280_v16, 2 }
  0x19   : > { %v262_v19 = vsel %vm260_vm5, %v261_v17, 0  ;;  %v282_v20 = vadd.f32 %v281_v18, %v280_v16 }
  0x1a   : > { %vm263_vm6 = vcmp.eq.s32.totalorder %v262_v19, %v243_v0 }
  0x1b   : > { %v418_v21 = vsel %vm263_vm6, 1.0, %v474_v8  ;;  %v283_v23 = vrot.slane %v282_v20, 1 }
  0x1c   : > { %v268_v22 = vsel %vm267_vm0, %v418_v21, 0.0 }
  0x1d   : > { %v269_v24 = vrot.slane %v268_v22, 4  ;;  %v284_v25 = vadd.f32 %v283_v23, %v282_v20 }
  0x1f   : > { %v270_v26 = vadd.f32 %v269_v24, %v268_v22  ;;  %285 = vst [vmem:[%s242_s26] sm:$0x1] %v284_v25 }
  0x21   : > { %v271_v27 = vrot.slane %v270_v26, 2 }
  0x23   : > { %v272_v28 = vadd.f32 %v271_v27, %v270_v26 }
  0x25   : > { %v273_v29 = vrot.slane %v272_v28, 1 }
  0x27   : > { %v274_v30 = vadd.f32 %v273_v29, %v272_v28 }
  0x29   : > { %275 = vst [vmem:[%s236_s29] sm:$0x1] %v274_v30 }
  0x2a PF: > { %s14_s14 = sadd.s32 1, %s471_s14   ;;  %s546_s12 = smov %s467_s13 }
  0x2b   : > { %p11_p5 = scmp.ge.s32.totalorder %s14_s14, 4   ;;  %s547_s13 = smov %s549_s15 }
  0x2d   :  { %13 = sbr.rel (!%p11_p5) target bundleno = 2 (0x2), region = 76 }

</bundles_post_ra>
